<compile_context>
chip_gen: v6e
topology: v6e:2x2x1
jax: 0.10.0
libtpu: 0.0.40
codegen_flags: <defaults>
</compile_context>

<pallas_src>
import functools

import jax
import jax.numpy as jnp
import numpy as np
from jax.experimental import pallas as pl
from jax.experimental.pallas import tpu as pltpu

_EPS = 1e-5


# --------------------------------------------------------------------------- #
# helpers
# --------------------------------------------------------------------------- #
def _act(x, kind, clip):
    if kind == "relu":
        return jnp.maximum(x, 0.0)
    # nn.Hardtanh(0.0, clipping_value)
    return jnp.clip(x, 0.0, clip)


# --------------------------------------------------------------------------- #
# Pass 1: conv1 (strided, dilated) + downsample 1x1 conv, + BN partial stats.
# Grid: (N // Nb,), "parallel".  x2 is the phase-decomposed padded input
# (Nb, L2, s*Cin) bf16: padded position q maps to row q//s, lanes (q%s)*Cin..
# --------------------------------------------------------------------------- #
def _stage_a_kernel(x2_ref, w1_ref, wd_ref, y1_ref, xd_ref, st_ref, *,
                    K, s, d, p, L_out, Cin, Cout, Nb):
    x2 = x2_ref[...]                                         # (Nb, L2, s*Cin)

    # conv1: K accumulated MXU dots (no concat-im2col lane repacking)
    acc = jnp.zeros((Nb * L_out, Cout), jnp.float32)
    for k in range(K):
        a, b = (k * d) // s, (k * d) % s                     # row offset / phase
        xk = x2[:, a:a + L_out, b * Cin:(b + 1) * Cin].reshape(Nb * L_out, Cin)
        acc = acc + jnp.dot(xk, w1_ref[k], preferred_element_type=jnp.float32)

    y1_bf = acc.astype(jnp.bfloat16)
    y1_ref[...] = y1_bf.reshape(Nb, L_out, Cout)
    y1r = y1_bf.astype(jnp.float32)          # stats on the stored (rounded) values
    st_ref[0, 0:1, :] = jnp.sum(y1r, axis=0, keepdims=True)
    st_ref[0, 1:2, :] = jnp.sum(y1r * y1r, axis=0, keepdims=True)

    # downsample branch: 1x1 strided conv
    ad, bd = p // s, p % s
    xk = x2[:, ad:ad + L_out, bd * Cin:(bd + 1) * Cin].reshape(Nb * L_out, Cin)
    xd = jnp.dot(xk, wd_ref[...], preferred_element_type=jnp.float32)
    xd_bf = xd.astype(jnp.bfloat16)
    xd_ref[...] = xd_bf.reshape(Nb, L_out, Cout)
    xdr = xd_bf.astype(jnp.float32)
    st_ref[0, 2:3, :] = jnp.sum(xdr, axis=0, keepdims=True)
    st_ref[0, 3:4, :] = jnp.sum(xdr * xdr, axis=0, keepdims=True)


def _stage_a_kernel_nodown(x2_ref, w1_ref, y1_ref, st_ref, *,
                           K, s, d, L_out, Cin, Cout, Nb):
    x2 = x2_ref[...]
    acc = jnp.zeros((Nb * L_out, Cout), jnp.float32)
    for k in range(K):
        a, b = (k * d) // s, (k * d) % s
        xk = x2[:, a:a + L_out, b * Cin:(b + 1) * Cin].reshape(Nb * L_out, Cin)
        acc = acc + jnp.dot(xk, w1_ref[k], preferred_element_type=jnp.float32)
    y1_bf = acc.astype(jnp.bfloat16)
    y1_ref[...] = y1_bf.reshape(Nb, L_out, Cout)
    y1r = y1_bf.astype(jnp.float32)
    st_ref[0, 0:1, :] = jnp.sum(y1r, axis=0, keepdims=True)
    st_ref[0, 1:2, :] = jnp.sum(y1r * y1r, axis=0, keepdims=True)


# --------------------------------------------------------------------------- #
# Pass 2: BN1 (folded scale/shift) + act + conv2 (stride 1), + BN2 partial
# stats.  conv2 padding lives in a persistent bf16 VMEM scratch.
# --------------------------------------------------------------------------- #
def _stage_b_kernel(y1_ref, bn1_ref, w2_ref, y2_ref, st_ref, ypad_ref, *,
                    K, d, p2, L_out, Cout, Nb, convs_act, clip):
    bn1 = bn1_ref[...]                                       # (2, Cout) f32
    sc = bn1[0:1, :].reshape(1, 1, Cout)
    sh = bn1[1:2, :].reshape(1, 1, Cout)
    y = _act(y1_ref[...].astype(jnp.float32) * sc + sh, convs_act, clip)

    # Re-zero only the 2*p2 pad rows each step (cheap; megacore-safe — a
    # pl.when(pid==0) guard would never fire on the second TensorCore).
    if p2 > 0:
        z = jnp.zeros((Nb, p2, Cout), jnp.bfloat16)
        ypad_ref[:, 0:p2, :] = z
        ypad_ref[:, p2 + L_out:2 * p2 + L_out, :] = z
    ypad_ref[:, p2:p2 + L_out, :] = y.astype(jnp.bfloat16)

    acc = jnp.zeros((Nb * L_out, Cout), jnp.float32)
    for k in range(K):
        xk = ypad_ref[:, k * d:k * d + L_out, :].reshape(Nb * L_out, Cout)
        acc = acc + jnp.dot(xk, w2_ref[k], preferred_element_type=jnp.float32)

    y2_bf = acc.astype(jnp.bfloat16)
    y2_ref[...] = y2_bf.reshape(Nb, L_out, Cout)
    y2r = y2_bf.astype(jnp.float32)
    st_ref[0, 0:1, :] = jnp.sum(y2r, axis=0, keepdims=True)
    st_ref[0, 1:2, :] = jnp.sum(y2r * y2r, axis=0, keepdims=True)


# --------------------------------------------------------------------------- #
# Python wrapper / parameter container
# --------------------------------------------------------------------------- #
class TCResidualBlockPallas:
    def __init__(self, input_channels, output_channels, size, stride, dilation,
                 clipping_value, bottleneck, channel_division, separable, small,
                 act, key):
        if bottleneck or small:
            raise NotImplementedError("only the default conv path is implemented")

        self.cin = input_channels
        self.cout = output_channels
        self.size = size
        self.stride = stride
        self.dilation = dilation
        self.clip = float(clipping_value)
        self.pad = dilation * (size // 2)

        # ---- reproduce the `act` re-binding chain of the torch __init__ ----
        def resolve(a):  # create_act(): only the *string* 'relu' yields ReLU
            return "relu" if a == "relu" else "hardtanh"

        act_state = act
        self.down_act = None
        if stride > 1:
            self.down_act = resolve(act_state)
            act_state = object()          # act re-bound to an nn.Module
        self.convs_act = resolve(act_state)
        act_state = object()
        self.final_act = resolve(act_state)   # always 'hardtanh'

        # ---- deterministic parameter init (torch conv weight layouts) ------
        k1, k2, k3 = jax.random.split(key, 3)
        self.w1 = 0.3 * jax.random.normal(k1, (output_channels, input_channels, size), jnp.float32)
        self.w2 = 0.3 * jax.random.normal(k2, (output_channels, output_channels, size), jnp.float32)
        self.wd = 0.3 * jax.random.normal(k3, (output_channels, input_channels, 1), jnp.float32)
        ones = jnp.ones((output_channels,), jnp.float32)
        zeros = jnp.zeros((output_channels,), jnp.float32)
        self.g1, self.b1 = ones, zeros
        self.g2, self.b2 = ones, zeros
        self.gd, self.bd = ones, zeros

    # ------------------ per-generation VMEM budget + batch tile ------------------ #
    @staticmethod
    def _vmem_limit_bytes():
        cap = 64 * 1024 * 1024            # conservative fallback (v7x physical)
        try:
            cap = int(pltpu.get_tpu_info().vmem_capacity_bytes)
        except Exception:
            pass
        # ~3/4 of physical: ~48 MiB on v7x, up to 96 MiB on v5e/v6e (capped 100 MiB)
        return min(cap * 3 // 4, 100 * 1024 * 1024)

    def _pick_batch_tile(self, N, L2, L_out, has_down, budget):
        K, s, p = self.size, self.stride, self.pad
        Cin, Cout = self.cin, self.cout

        def est(nb):                      # double-buffered block footprint
            x2b = nb * L2 * s * Cin * 2
            y1b = nb * L_out * Cout * 2
            xdb = nb * L_out * Cout * 2 if has_down else 0
            stb = 4 * Cout * 4
            wa = (K * Cin * Cout + Cin * Cout) * 2
            a = 2 * (x2b + y1b + xdb + stb) + 2 * wa
            wb = K * Cout * Cout * 2 + 2 * Cout * 4
            padb = nb * (L_out + 2 * p) * Cout * 2
            b = 2 * (y1b + y1b + stb) + 2 * wb + padb
            return max(a, b)

        # Nb must divide N (keeps BN stats exact); prefer grid >= 2 so v7x can
        # shard the batch axis across both TensorCores; pick the largest Nb
        # fitting the VMEM budget (bigger Nb*L_out -> fuller MXU passes).
        best = 1
        for nb in range(1, N + 1):
            if N % nb:
                continue
            if N >= 2 and N // nb < 2:
                continue
            if est(nb) <= budget:
                best = nb
        return best

    # -------------------- Pallas forward -------------------- #
    def __call__(self, x_ncl):
        N, Cin, L = x_ncl.shape
        K, s, dil, p = self.size, self.stride, self.dilation, self.pad
        Cout = self.cout
        L_out = (L + 2 * p - dil * (K - 1) - 1) // s + 1
        has_down = s > 1
        if has_down:
            assert (L - 1) // s + 1 == L_out, "residual shapes must match"
        else:
            assert Cin == Cout, "identity residual needs Cin == Cout"

        # zero-pad + phase-decompose by the stride so every in-kernel tap is a
        # contiguous static slice; shipped as bf16 (only ever an MXU operand).
        L2 = max(L_out + (dil * (K - 1)) // s, -(-(p + L) // s))
        right = s * L2 - p - L
        x_nlc = jnp.transpose(x_ncl, (0, 2, 1)).astype(jnp.float32)
        x2 = jnp.pad(x_nlc, ((0, 0), (p, right), (0, 0))).reshape(
            N, L2, s * Cin).astype(jnp.bfloat16)

        # packed bf16 weights: (K, Cin, Cout) / (K, Cout, Cout) / (Cin, Cout)
        w1p = jnp.transpose(self.w1, (2, 1, 0)).astype(jnp.bfloat16)
        w2p = jnp.transpose(self.w2, (2, 1, 0)).astype(jnp.bfloat16)
        wdp = jnp.transpose(self.wd[:, :, 0], (1, 0)).astype(jnp.bfloat16)

        vmem_limit = self._vmem_limit_bytes()
        Nb = self._pick_batch_tile(N, L2, L_out, has_down, budget=vmem_limit * 4 // 5)
        G = N // Nb

        cparams = pltpu.CompilerParams(
            dimension_semantics=("parallel",),   # shard batch over v7x's 2 TCs
            vmem_limit_bytes=vmem_limit,
        )

        def full(shape):
            return pl.BlockSpec(shape, lambda i, _n=len(shape): (0,) * _n)

        def per_g(d1, d2):
            return pl.BlockSpec((Nb, d1, d2), lambda i: (i, 0, 0))

        # ---------- pass 1: conv1 (+ downsample conv) + BN partial stats ------
        if has_down:
            y1_raw, xd_raw, st1 = pl.pallas_call(
                functools.partial(_stage_a_kernel, K=K, s=s, d=dil, p=p,
                                  L_out=L_out, Cin=Cin, Cout=Cout, Nb=Nb),
                grid=(G,),
                in_specs=[per_g(L2, s * Cin), full((K, Cin, Cout)), full((Cin, Cout))],
                out_specs=(per_g(L_out, Cout), per_g(L_out, Cout),
                           pl.BlockSpec((1, 4, Cout), lambda i: (i, 0, 0))),
                out_shape=(jax.ShapeDtypeStruct((N, L_out, Cout), jnp.bfloat16),
                           jax.ShapeDtypeStruct((N, L_out, Cout), jnp.bfloat16),
                           jax.ShapeDtypeStruct((G, 4, Cout), jnp.float32)),
                compiler_params=cparams,
            )(x2, w1p, wdp)
        else:
            y1_raw, st1 = pl.pallas_call(
                functools.partial(_stage_a_kernel_nodown, K=K, s=s, d=dil,
                                  L_out=L_out, Cin=Cin, Cout=Cout, Nb=Nb),
                grid=(G,),
                in_specs=[per_g(L2, s * Cin), full((K, Cin, Cout))],
                out_specs=(per_g(L_out, Cout),
                           pl.BlockSpec((1, 2, Cout), lambda i: (i, 0, 0))),
                out_shape=(jax.ShapeDtypeStruct((N, L_out, Cout), jnp.bfloat16),
                           jax.ShapeDtypeStruct((G, 2, Cout), jnp.float32)),
                compiler_params=cparams,
            )(x2, w1p)
            xd_raw = None

        # fold training-mode BN stats (biased variance) into scale/shift
        inv_count = 1.0 / float(N * L_out)

        def fold(srow, qrow, gamma, beta):
            mean = srow * inv_count
            # TODO(synk): E[x^2]-E[x]^2 can cancel for very long sequences;
            # switch to a two-pass mean/var if this block feeds a deep network.
            var = jnp.maximum(qrow * inv_count - mean * mean, 0.0)
            scale = gamma * jax.lax.rsqrt(var + _EPS)
            return scale, beta - mean * scale

        tot1 = jnp.sum(st1, axis=0)
        sc1, sh1 = fold(tot1[0], tot1[1], self.g1, self.b1)
        bn1 = jnp.stack([sc1, sh1], axis=0)                   # (2, Cout) f32

        # ---------- pass 2: BN1 + act + conv2 + BN2 partial stats -----------
        y2_raw, st2 = pl.pallas_call(
            functools.partial(_stage_b_kernel, K=K, d=dil, p2=p, L_out=L_out,
                              Cout=Cout, Nb=Nb, convs_act=self.convs_act,
                              clip=self.clip),
            grid=(G,),
            in_specs=[per_g(L_out, Cout), full((2, Cout)), full((K, Cout, Cout))],
            out_specs=(per_g(L_out, Cout),
                       pl.BlockSpec((1, 2, Cout), lambda i: (i, 0, 0))),
            out_shape=(jax.ShapeDtypeStruct((N, L_out, Cout), jnp.bfloat16),
                       jax.ShapeDtypeStruct((G, 2, Cout), jnp.float32)),
            scratch_shapes=[pltpu.VMEM((Nb, L_out + 2 * p, Cout), jnp.bfloat16)],
            compiler_params=cparams,
        )(y1_raw, bn1, w2p)

        # ---------- epilogue (pure elementwise) in plain XLA ----------------
        tot2 = jnp.sum(st2, axis=0)
        sc2, sh2 = fold(tot2[0], tot2[1], self.g2, self.b2)
        y2 = jnp.transpose(y2_raw, (0, 2, 1)).astype(jnp.float32)   # NCL
        y2 = y2 * sc2[None, :, None] + sh2[None, :, None]

        if has_down:
            scd, shd = fold(tot1[2], tot1[3], self.gd, self.bd)
            xd = jnp.transpose(xd_raw, (0, 2, 1)).astype(jnp.float32)
            xd = _act(xd * scd[None, :, None] + shd[None, :, None],
                      self.down_act, self.clip)
        else:
            xd = x_ncl.astype(jnp.float32)     # identity residual stays f32

        return _act(y2 + xd, self.final_act, self.clip)        # (N, Cout, L_out)

    # -------------------- pure-JAX reference (for self-check) -------------------- #
    def reference(self, x_ncl):
        def conv1d(x, w, stride, padding, dilation):
            return jax.lax.conv_general_dilated(
                x, w, window_strides=(stride,), padding=[(padding, padding)],
                rhs_dilation=(dilation,), dimension_numbers=("NCH", "OIH", "NCH"),
                precision=jax.lax.Precision.HIGHEST,
            )

        def bn(x, gamma, beta, eps=_EPS):
            mean = jnp.mean(x, axis=(0, 2), keepdims=True)
            var = jnp.mean(jnp.square(x - mean), axis=(0, 2), keepdims=True)
            xh = (x - mean) / jnp.sqrt(var + eps)
            return xh * gamma.reshape(1, -1, 1) + beta.reshape(1, -1, 1)

        def act(x, kind):
            return jnp.maximum(x, 0.0) if kind == "relu" else jnp.clip(x, 0.0, self.clip)

        y = conv1d(x_ncl, self.w1, self.stride, self.pad, self.dilation)
        y = act(bn(y, self.g1, self.b1), self.convs_act)
        y = conv1d(y, self.w2, 1, self.pad, self.dilation)
        y = bn(y, self.g2, self.b2)
        if self.stride > 1:
            xd = conv1d(x_ncl, self.wd, self.stride, 0, 1)
            xd = act(bn(xd, self.gd, self.bd), self.down_act)
        else:
            xd = x_ncl
        return act(y + xd, self.final_act)


# --------------------------------------------------------------------------- #
if __name__ == "__main__":
    key = jax.random.PRNGKey(0)
    kx, kp = jax.random.split(key)

    N, Cin, Cout, L = 2, 4, 8, 16
    size, stride, dilation, clipping_value = 3, 2, 1, 6.0

    x = jax.random.normal(kx, (N, Cin, L), jnp.float32)

    block = TCResidualBlockPallas(
        input_channels=Cin, output_channels=Cout, size=size, stride=stride,
        dilation=dilation, clipping_value=clipping_value, bottleneck=False,
        channel_division=2, separable=False, small=False, act="relu", key=kp,
    )

    out = jax.block_until_ready(block(x))
    ref = jax.block_until_ready(block.reference(x))

    L_out = (L + 2 * (size // 2) - (size - 1) - 1) // stride + 1
    assert out.shape == ref.shape == (N, Cout, L_out)
    # bf16 MXU operands / bf16 inter-stage storage vs f32 HIGHEST reference.
    np.testing.assert_allclose(np.asarray(out), np.asarray(ref), rtol=5e-2, atol=5e-2)

    print("KERNEL_OK")
</pallas_src>

<mosaic_0001>
module attributes {stable_mosaic.version = 11 : i64} {
  func.func @_stage_a_kernel(%arg0: i32, %arg1: memref<1x9x8xbf16, #tpu.memory_space<vmem>>, %arg2: memref<3x4x8xbf16, #tpu.memory_space<vmem>>, %arg3: memref<4x8xbf16, #tpu.memory_space<vmem>>, %arg4: memref<1x8x8xbf16, #tpu.memory_space<vmem>>, %arg5: memref<1x8x8xbf16, #tpu.memory_space<vmem>>, %arg6: memref<1x4x8xf32, #tpu.memory_space<vmem>>) attributes {dimension_semantics = [#tpu.dimension_semantics<parallel>], iteration_bounds = array<i64: 2>, scalar_prefetch = 0 : i64, scratch_operands = 0 : i64, tpu.core_type = #tpu.core_type<tc>, window_params = [{transform_indices = @transform_0, window_bounds = array<i64: 1, 9, 8>}, {pipeline_mode = #tpu.pipeline_mode<synchronous>, transform_indices = @transform_1, window_bounds = array<i64: 3, 4, 8>}, {pipeline_mode = #tpu.pipeline_mode<synchronous>, transform_indices = @transform_2, window_bounds = array<i64: 4, 8>}, {transform_indices = @transform_3, window_bounds = array<i64: 1, 8, 8>}, {transform_indices = @transform_4, window_bounds = array<i64: 1, 8, 8>}, {transform_indices = @transform_5, window_bounds = array<i64: 1, 4, 8>}]} {
    %c0 = arith.constant 0 : index
    %c0_0 = arith.constant 0 : index
    %c0_1 = arith.constant 0 : index
    %0 = vector.load %arg1[%c0, %c0_0, %c0_1] : memref<1x9x8xbf16, #tpu.memory_space<vmem>>, vector<1x9x8xbf16>
    %cst = arith.constant 0.000000e+00 : f32
    %1 = vector.broadcast %cst : f32 to vector<8x8xf32>
    %2 = vector.extract_strided_slice %0 {offsets = [0, 0, 0], sizes = [1, 8, 4], strides = [1, 1, 1]} : vector<1x9x8xbf16> to vector<1x8x4xbf16>
    %3 = vector.shape_cast %2 : vector<1x8x4xbf16> to vector<8x4xbf16>
    %c0_2 = arith.constant 0 : index
    %c0_3 = arith.constant 0 : index
    %c0_4 = arith.constant 0 : index
    %4 = vector.load %arg2[%c0_2, %c0_3, %c0_4] : memref<3x4x8xbf16, #tpu.memory_space<vmem>>, vector<1x4x8xbf16>
    %5 = vector.shape_cast %4 : vector<1x4x8xbf16> to vector<4x8xbf16>
    %cst_5 = arith.constant dense<0.000000e+00> : vector<8x8xf32>
    %6 = tpu.matmul %3, %5, %cst_5 {dimension_numbers = #tpu.dot_dimension_numbers<[1], [0], [0], [1], [0, 0, 1, 1], [], []>} : vector<8x4xbf16>, vector<4x8xbf16>, vector<8x8xf32> -> vector<8x8xf32>
    %7 = arith.addf %1, %6 : vector<8x8xf32>
    %8 = vector.extract_strided_slice %0 {offsets = [0, 0, 4], sizes = [1, 8, 4], strides = [1, 1, 1]} : vector<1x9x8xbf16> to vector<1x8x4xbf16>
    %9 = vector.shape_cast %8 : vector<1x8x4xbf16> to vector<8x4xbf16>
    %c1 = arith.constant 1 : index
    %c0_6 = arith.constant 0 : index
    %c0_7 = arith.constant 0 : index
    %10 = vector.load %arg2[%c1, %c0_6, %c0_7] : memref<3x4x8xbf16, #tpu.memory_space<vmem>>, vector<1x4x8xbf16>
    %11 = vector.shape_cast %10 : vector<1x4x8xbf16> to vector<4x8xbf16>
    %cst_8 = arith.constant dense<0.000000e+00> : vector<8x8xf32>
    %12 = tpu.matmul %9, %11, %cst_8 {dimension_numbers = #tpu.dot_dimension_numbers<[1], [0], [0], [1], [0, 0, 1, 1], [], []>} : vector<8x4xbf16>, vector<4x8xbf16>, vector<8x8xf32> -> vector<8x8xf32>
    %13 = arith.addf %7, %12 : vector<8x8xf32>
    %14 = vector.extract_strided_slice %0 {offsets = [0, 1, 0], sizes = [1, 8, 4], strides = [1, 1, 1]} : vector<1x9x8xbf16> to vector<1x8x4xbf16>
    %15 = vector.shape_cast %14 : vector<1x8x4xbf16> to vector<8x4xbf16>
    %c2 = arith.constant 2 : index
    %c0_9 = arith.constant 0 : index
    %c0_10 = arith.constant 0 : index
    %16 = vector.load %arg2[%c2, %c0_9, %c0_10] : memref<3x4x8xbf16, #tpu.memory_space<vmem>>, vector<1x4x8xbf16>
    %17 = vector.shape_cast %16 : vector<1x4x8xbf16> to vector<4x8xbf16>
    %cst_11 = arith.constant dense<0.000000e+00> : vector<8x8xf32>
    %18 = tpu.matmul %15, %17, %cst_11 {dimension_numbers = #tpu.dot_dimension_numbers<[1], [0], [0], [1], [0, 0, 1, 1], [], []>} : vector<8x4xbf16>, vector<4x8xbf16>, vector<8x8xf32> -> vector<8x8xf32>
    %19 = arith.addf %13, %18 : vector<8x8xf32>
    %20 = arith.truncf %19 : vector<8x8xf32> to vector<8x8xbf16>
    %21 = vector.shape_cast %20 : vector<8x8xbf16> to vector<1x8x8xbf16>
    %c0_12 = arith.constant 0 : index
    %c0_13 = arith.constant 0 : index
    %c0_14 = arith.constant 0 : index
    %22 = vector.load %arg4[%c0_12, %c0_13, %c0_14] : memref<1x8x8xbf16, #tpu.memory_space<vmem>>, vector<1x8x8xbf16>
    tpu.vector_store %arg4[%c0_12, %c0_13, %c0_14], %21 {strides = array<i32>} : memref<1x8x8xbf16, #tpu.memory_space<vmem>>, vector<1x8x8xbf16>,
    %23 = arith.extf %20 : vector<8x8xbf16> to vector<8x8xf32>
    %cst_15 = arith.constant dense<0.000000e+00> : vector<8xf32>
    %24 = vector.multi_reduction <add>, %23, %cst_15 [0] : vector<8x8xf32> to vector<8xf32>
    %25 = vector.shape_cast %24 : vector<8xf32> to vector<1x8xf32>
    %c0_16 = arith.constant 0 : index
    %c0_17 = arith.constant 0 : index
    %c0_18 = arith.constant 0 : index
    %26 = vector.load %arg6[%c0_16, %c0_17, %c0_18] : memref<1x4x8xf32, #tpu.memory_space<vmem>>, vector<1x1x8xf32>
    %27 = vector.shape_cast %26 : vector<1x1x8xf32> to vector<1x8xf32>
    %28 = vector.shape_cast %25 : vector<1x8xf32> to vector<1x1x8xf32>
    tpu.vector_store %arg6[%c0_16, %c0_17, %c0_18], %28 {strides = array<i32>} : memref<1x4x8xf32, #tpu.memory_space<vmem>>, vector<1x1x8xf32>,
    %29 = arith.mulf %23, %23 : vector<8x8xf32>
    %cst_19 = arith.constant dense<0.000000e+00> : vector<8xf32>
    %30 = vector.multi_reduction <add>, %29, %cst_19 [0] : vector<8x8xf32> to vector<8xf32>
    %31 = vector.shape_cast %30 : vector<8xf32> to vector<1x8xf32>
    %c0_20 = arith.constant 0 : index
    %c1_21 = arith.constant 1 : index
    %c0_22 = arith.constant 0 : index
    %32 = vector.load %arg6[%c0_20, %c1_21, %c0_22] : memref<1x4x8xf32, #tpu.memory_space<vmem>>, vector<1x1x8xf32>
    %33 = vector.shape_cast %32 : vector<1x1x8xf32> to vector<1x8xf32>
    %34 = vector.shape_cast %31 : vector<1x8xf32> to vector<1x1x8xf32>
    tpu.vector_store %arg6[%c0_20, %c1_21, %c0_22], %34 {strides = array<i32>} : memref<1x4x8xf32, #tpu.memory_space<vmem>>, vector<1x1x8xf32>,
    %35 = vector.extract_strided_slice %0 {offsets = [0, 0, 4], sizes = [1, 8, 4], strides = [1, 1, 1]} : vector<1x9x8xbf16> to vector<1x8x4xbf16>
    %36 = vector.shape_cast %35 : vector<1x8x4xbf16> to vector<8x4xbf16>
    %c0_23 = arith.constant 0 : index
    %c0_24 = arith.constant 0 : index
    %37 = vector.load %arg3[%c0_23, %c0_24] : memref<4x8xbf16, #tpu.memory_space<vmem>>, vector<4x8xbf16>
    %cst_25 = arith.constant dense<0.000000e+00> : vector<8x8xf32>
    %38 = tpu.matmul %36, %37, %cst_25 {dimension_numbers = #tpu.dot_dimension_numbers<[1], [0], [0], [1], [0, 0, 1, 1], [], []>} : vector<8x4xbf16>, vector<4x8xbf16>, vector<8x8xf32> -> vector<8x8xf32>
    %39 = arith.truncf %38 : vector<8x8xf32> to vector<8x8xbf16>
    %40 = vector.shape_cast %39 : vector<8x8xbf16> to vector<1x8x8xbf16>
    %c0_26 = arith.constant 0 : index
    %c0_27 = arith.constant 0 : index
    %c0_28 = arith.constant 0 : index
    %41 = vector.load %arg5[%c0_26, %c0_27, %c0_28] : memref<1x8x8xbf16, #tpu.memory_space<vmem>>, vector<1x8x8xbf16>
    tpu.vector_store %arg5[%c0_26, %c0_27, %c0_28], %40 {strides = array<i32>} : memref<1x8x8xbf16, #tpu.memory_space<vmem>>, vector<1x8x8xbf16>,
    %42 = arith.extf %39 : vector<8x8xbf16> to vector<8x8xf32>
    %cst_29 = arith.constant dense<0.000000e+00> : vector<8xf32>
    %43 = vector.multi_reduction <add>, %42, %cst_29 [0] : vector<8x8xf32> to vector<8xf32>
    %44 = vector.shape_cast %43 : vector<8xf32> to vector<1x8xf32>
    %c0_30 = arith.constant 0 : index
    %c2_31 = arith.constant 2 : index
    %c0_32 = arith.constant 0 : index
    %45 = vector.load %arg6[%c0_30, %c2_31, %c0_32] : memref<1x4x8xf32, #tpu.memory_space<vmem>>, vector<1x1x8xf32>
    %46 = vector.shape_cast %45 : vector<1x1x8xf32> to vector<1x8xf32>
    %47 = vector.shape_cast %44 : vector<1x8xf32> to vector<1x1x8xf32>
    tpu.vector_store %arg6[%c0_30, %c2_31, %c0_32], %47 {strides = array<i32>} : memref<1x4x8xf32, #tpu.memory_space<vmem>>, vector<1x1x8xf32>,
    %48 = arith.mulf %42, %42 : vector<8x8xf32>
    %cst_33 = arith.constant dense<0.000000e+00> : vector<8xf32>
    %49 = vector.multi_reduction <add>, %48, %cst_33 [0] : vector<8x8xf32> to vector<8xf32>
    %50 = vector.shape_cast %49 : vector<8xf32> to vector<1x8xf32>
    %c0_34 = arith.constant 0 : index
    %c3 = arith.constant 3 : index
    %c0_35 = arith.constant 0 : index
    %51 = vector.load %arg6[%c0_34, %c3, %c0_35] : memref<1x4x8xf32, #tpu.memory_space<vmem>>, vector<1x1x8xf32>
    %52 = vector.shape_cast %51 : vector<1x1x8xf32> to vector<1x8xf32>
    %53 = vector.shape_cast %50 : vector<1x8xf32> to vector<1x1x8xf32>
    tpu.vector_store %arg6[%c0_34, %c3, %c0_35], %53 {strides = array<i32>} : memref<1x4x8xf32, #tpu.memory_space<vmem>>, vector<1x1x8xf32>,
    return
  }
  func.func @transform_0(%arg0: i32) -> (i32, i32, i32) {
    %c0_i32 = arith.constant 0 : i32
    %c0_i32_0 = arith.constant 0 : i32
    %c0_i32_1 = arith.constant 0 : i32
    return %arg0, %c0_i32, %c0_i32_0 : i32, i32, i32
  }
  func.func @transform_1(%arg0: i32) -> (i32, i32, i32) {
    %c0_i32 = arith.constant 0 : i32
    %c0_i32_0 = arith.constant 0 : i32
    %c0_i32_1 = arith.constant 0 : i32
    %c0_i32_2 = arith.constant 0 : i32
    return %c0_i32, %c0_i32_0, %c0_i32_1 : i32, i32, i32
  }
  func.func @transform_2(%arg0: i32) -> (i32, i32) {
    %c0_i32 = arith.constant 0 : i32
    %c0_i32_0 = arith.constant 0 : i32
    %c0_i32_1 = arith.constant 0 : i32
    return %c0_i32, %c0_i32_0 : i32, i32
  }
  func.func @transform_3(%arg0: i32) -> (i32, i32, i32) {
    %c0_i32 = arith.constant 0 : i32
    %c0_i32_0 = arith.constant 0 : i32
    %c0_i32_1 = arith.constant 0 : i32
    return %arg0, %c0_i32, %c0_i32_0 : i32, i32, i32
  }
  func.func @transform_4(%arg0: i32) -> (i32, i32, i32) {
    %c0_i32 = arith.constant 0 : i32
    %c0_i32_0 = arith.constant 0 : i32
    %c0_i32_1 = arith.constant 0 : i32
    return %arg0, %c0_i32, %c0_i32_0 : i32, i32, i32
  }
  func.func @transform_5(%arg0: i32) -> (i32, i32, i32) {
    %c0_i32 = arith.constant 0 : i32
    %c0_i32_0 = arith.constant 0 : i32
    %c0_i32_1 = arith.constant 0 : i32
    return %arg0, %c0_i32, %c0_i32_0 : i32, i32, i32
  }
}

</mosaic_0001>

<bundles_post_ra>
// kernel: tpu_custom_call.1
= control target key start
LH: loop header
LB: loop body
LE: loop exit
PB: predicated region body
PF: predicated region fallthrough
CT: control target
= control target key end

     0   :  { %11 = vsyncpa [#allocation3], 0  ;;  %s1126_s0 = inlined_call_operand.vmem [shape: bf16[2,9,8], index: 0, kind: input, shape index: {}]   ;;  %s1127_s1 = inlined_call_operand.vmem [shape: bf16[3,4,8], index: 1, kind: input, shape index: {}]   ;;  %s1128_s2 = inlined_call_operand.vmem [shape: bf16[4,8], index: 2, kind: input, shape index: {}]   ;;  %s1129_s3 = inlined_call_operand.hbm [shape: bf16[2,8,8], index: 3, kind: output, shape index: {0}]   ;;  %s1130_s4 = inlined_call_operand.hbm [shape: bf16[2,8,8], index: 4, kind: output, shape index: {1}]   ;;  %s1131_s5 = inlined_call_operand.hbm [shape: f32[2,4,8], index: 5, kind: output, shape index: {2}]  }
   0x1   :  { %13 = vsyncpa [#allocation3 + $0x1], 0 }
   0x2   :  { %14 = vsyncpa [#allocation5], 0 }
   0x3   :  { %16 = vsyncpa [#allocation5 + $0x1], 0  ;;  %s928_s18 = smov 0   ;;  %s930_s19 = smov 0  }
   0x4   :  { %s932_s20 = smov 0   ;;  %s934_s21 = smov 0  }
   0x5 LB: > { %s949_s22 = sadd.s32 4294967295, %s890_s21   ;;  %s662_s23 = sadd.s32 4294967294, %s890_s21   ;;  %s890_s21 = sphi %s934_s21, %s1137_s21   ;;  %s886_s20 = sphi %s932_s20, %s1136_s20   ;;  %s882_s19 = sphi %s930_s19, %s1135_s19   ;;  %s878_s18 = sphi %s928_s18, %s1134_s18  }
   0x6   : > { %s953_s24 = sadd.s32 1, %s890_s21   ;;  %s97_s25 = sadd.s32 1, %s886_s20 }
   0x7   : > { %s94_s26 = ssub.s32 %s890_s21, %s953_s24  ;;  %p107_p0 = scmp.ne.s32.totalorder %s886_s20, %s882_s19 }
   0x8   : > { %p95_p1 = scmp.eq.s32.totalorder %s94_s26, 0  ;;  %p108_p2 = scmp.eq.s32.totalorder %s949_s22, 1 }
   0x9   : > { %p113_p3 = scmp.ne.s32.totalorder %s882_s19, %s878_s18  ;;  %p114_p4 = scmp.eq.s32.totalorder %s662_s23, 1 }
   0xa   : > { %s966_s27 = scalar_select %p95_p1, %s886_s20, %s97_s25  }
   0xb   : > { %p968_p5 = por %p108_p2, %p107_p0  ;;  %p972_p6 = por %p114_p4, %p113_p3 }
   0xc   : > { %p665_p7 = scmp.ge.s32.totalorder %s890_s21, 1  ;;  %p198_p8 = scmp.lt.s32.totalorder %s890_s21, 3 }
   0xe   : > { %p199_p9 = pnand %p665_p7, %p198_p8 }
   0xf   : > { %p236_p10 = scmp.lt.s32.totalorder (!%p199_p9), %s949_s22, 1  ;;  %s894_s16 = smov (!%p199_p9), 124  }
  0x10   : > { %202 = sbr.rel (%p199_p9) target bundleno = 403 (0x193), region = 32  ;;  %s219_s26 = sand.u32 (!%p199_p9), 1, %s882_s19  }
  0x11   : > { %s1010_s30 = sshll.u32 (!%p199_p9), %s219_s26, 2  ;;  %s497_s6 = sand.u32 (!%p199_p9), 1, %s949_s22  }
  0x12   : > { %s1014_s7 = sshll.u32 (!%p199_p9), %s949_s22, 6  ;;  %s228_s8 = scalar_lea.vmem (!%p199_p9), [#allocation4], %s1010_s30 }
  0x13   : > { %s895_s14 = smov (!%p199_p9), [#allocation4]  }
  0x15   : > { %v244_v0 = vld [vmem:[%s1127_s1] sm:$0x3]  ;;  %vm256_vm0 = vcmask 1041408   ;;  %v892_v1 = vmov 0.0   ;;  %v671_v3 = vld [vmem:[%s1127_s1 + $0x2] sm:$0x3] }
  0x16   : > { %702 = vmatprep.subr.bf16.mxu1 %v892_v1  ;;  %v304_v2 = vsel %vm256_vm0, %v244_v0, 0  ;;  %696 = vmatprep.subr.bf16.mxu0 %v892_v1  ;;  %s237_s9 = scalar_select %p236_p10, %s949_s22, 1  ;;  %vm893_vm1 = vmmov 0   ;;  %v258_v4 = vsel %vm256_vm0, %v671_v3, 0  ;;  %v428_v5 = vld [vmem:[%s1128_s2] sm:$0x3] }
  0x17   : > { %703 = vmatpush3.bf16.msra.mxu1 %v304_v2  ;;  %704 = vmatprep.mubr.msk.bf16.mxu1 %vm893_vm1, %v892_v1  ;;  %vm252_vm2 = vcmask 31744   ;;  %v430_v6 = vsel %vm256_vm0, %v428_v5, 0  ;;  %v675_v11 = vld [vmem:[%s1127_s1 + $0x4] sm:$0x3]  ;;  %vm406_vm3 = vcmask 60416   ;;  %vm409_vm4 = vcmask 64512  }
  0x18   : > { %697 = vmatpush3.bf16.msra.mxu0 %v258_v4  ;;  %714 = vmatprep.subr.bf16.mxu1 %v892_v1  ;;  %s687_s12 = sshll.u32 %s237_s9, 3  ;;  %v362_v13 = vsel %vm256_vm0, %v675_v11, 0  ;;  %s529_s9 = sshll.u32 %s228_s8, 4  ;;  %s1023_s9 = int_to_ptr.vmem [resolvable:$true] %s529_s9 }
  0x19   : > { %698 = vmatprep.mubr.msk.bf16.mxu0 %vm893_vm1, %v892_v1  ;;  %708 = vmatprep.subr.bf16.mxu0 %v892_v1  ;;  %s240_s15 = scalar_lea.vmem %s1126_s0, %s687_s12  ;;  %s1021_s12 = scalar_lea.hbm %s1130_s4, %s1014_s7 }
  0x1a   : > { %v242_v7 = vld [vmem:[%s240_s15] sm:$0xf]  ;;  %v243_v8 = vld [vmem:[%s240_s15 + $0x4] sm:$0x1]  ;;  %s1026_s22 = scalar_lea.sflag [#allocation5], %s497_s6  ;;  %s774_s13 = scalar_lea.vmem %s1023_s9, 64 }
  0x1b   : > { %v672_v9 = vcombine.low %v242_v7, %v242_v7  ;;  %v676_v10 = vcombine.low %v242_v7, %v243_v8  ;;  %705 = vmatmul.mubr.msk.bf16.vlgmr.msra.gmra.mxu1 %vm252_vm2, %v242_v7  ;;  %p775_p11 = scmp.ne.s32.totalorder %s1023_s9, %s774_s13  ;;  %s778_s15 = sshll.u32 %s895_s14, 4  ;;  %s779_s15 = int_to_ptr.vmem [resolvable:$false] %s778_s15 }
  0x1c   : > { %715 = vmatpush3.bf16.msra.mxu1 %v430_v6  ;;  %716 = vmatprep.mubr.msk.bf16.mxu1 %vm893_vm1, %v892_v1  ;;  %p781_p0 = scmp.lt.s32.totalorder %s1023_s9, %s779_s15 }
  0x1d   : > { %250 = vrot.lane.b32.xlu0 %v672_v9, %s894_s16  ;;  %v354_v12 = vshll.u32 %v676_v10, 16  ;;  %v352_v15 = vshrl.u32 %v676_v10, 16  ;;  %p776_p12 = pnand %p775_p11, %p968_p5  ;;  %s780_s16 = scalar_lea.vmem %s779_s15, 128 }
  0x1e   : > { %p782_p1 = scmp.lt.s32.totalorder %s780_s16, %s774_s13 }
  0x1f   : > { %v356_v16 = vrot.slane %v354_v12, 1  ;;  %p777_p13 = pneg %p776_p12 }
  0x20   : > { %p783_p2 = por %p782_p1, %p781_p0 }
  0x21   : > { %v357_v17 = vor.u32 %v356_v16, %v352_v15 }
  0x22   : > { %p784_p3 = pnand %p783_p2, %p777_p13 }
  0x8f   : > { %v251_v14 = vpop.permute.xlu0 %250 }
  0x90   : > { %699 = vmatmul.mubr.msk.bf16.vlgmr.msra.gmra.mxu0 %vm252_vm2, %v251_v14  ;;  %717 = vmatmul.mubr.msk.bf16.vlgmr.msra.gmra.mxu1 %vm252_vm2, %v251_v14 }
  0x91   : > { %709 = vmatpush3.bf16.msra.mxu0 %v362_v13  ;;  %710 = vmatprep.mubr.msk.bf16.mxu0 %vm893_vm1, %v892_v1 }
  0x98   : > { %711 = vmatmul.mubr.msk.bf16.vlgmr.msra.gmra.mxu0 %vm252_vm2, %v357_v17 }
  0xdb   : > { %v340_v18 = vpop.f32.mrf.mxu1 }
  0xdd   : > { %v706_v19 = vpop.f32.mrf.mxu1 }
  0xdf   : > { %v343_v20 = vpop.f32.mrf.mxu1 }
  0xe1   : > { %v707_v21 = vpop.f32.mrf.mxu1 }
 0x150   : > { %v294_v22 = vpop.f32.mrf.mxu0  ;;  %v466_v23 = vpop.f32.mrf.mxu1 }
 0x151   : > { %v472_v24 = vpack.c.bf16 %v466_v23, %v466_v23 }
 0x152   : > { %v700_v25 = vpop.f32.mrf.mxu0  ;;  %v718_v26 = vpop.f32.mrf.mxu1 }
 0x153   : > { %v474_v27 = vunpack.c.l.bf16 %v472_v24  ;;  %473 = vst.msk [vmem:[%s228_s8] sm:$0xf] %vm406_vm3, %v472_v24 }
 0x154   : > { %v297_v28 = vpop.f32.mrf.mxu0  ;;  %v469_v29 = vpop.f32.mrf.mxu1 }
 0x155   : > { %787 = shalt.err (!%p784_p3)
}
 0x156   : > { %s788_s17 = scalar_lea.hbm %s1021_s12, 64  ;;  %s792_s8 = scalar_lea.hbm %s1130_s4, 128 }
 0x157   : > { %p789_p4 = scmp.ne.s32.totalorder %s1021_s12, %s788_s17  ;;  %p793_p9 = scmp.lt.s32.totalorder %s1021_s12, %s1130_s4 }
 0x158   : > { %p794_p10 = scmp.lt.s32.totalorder %s792_s8, %s788_s17 }
 0x159   : > { %p790_p7 = pnand %p789_p4, %p968_p5 }
 0x15a   : > { %p795_p11 = por %p794_p10, %p793_p9 }
 0x15b   : > { %p791_p8 = pneg %p790_p7 }
 0x15d   : > { %p796_p12 = pnand %p795_p11, %p791_p8 }
 0x15f   : > { %799 = shalt.err (!%p796_p12)
}
 0x160   : > { %721 = dma.vmem_to_hbm [thread:$0]  (%p968_p5), %s1023_s9, 64, %s1021_s12, %s1026_s22   ;;  %v475_v30 = vsel %vm409_vm4, %v474_v27, 0.0  ;;  %v483_v31 = vmul.f32 %v474_v27, %v474_v27  ;;  %v701_v33 = vpop.f32.mrf.mxu0  ;;  %v719_v34 = vpop.f32.mrf.mxu1  ;;  %v341_v35 = vadd.f32 %v340_v18, %v294_v22 }
 0x161   : > { %v476_v32 = vrot.slane %v475_v30, 4  ;;  %s221_s13 = scalar_lea.vmem [#allocation2], %s1010_s30  ;;  %s1056_s15 = scalar_lea.hbm %s1129_s3, %s1014_s7 }
 0x162   : > { %v484_v36 = vsel %vm409_vm4, %v483_v31, 0.0  ;;  %v398_v39 = vpop.f32.mrf.mxu0  ;;  %s516_s14 = sshll.u32 %s221_s13, 4  ;;  %s493_s16 = scalar_lea.sflag [#allocation3], %s219_s26  ;;  %s1058_s14 = int_to_ptr.vmem [resolvable:$true] %s516_s14 }
 0x163   : > { %v477_v37 = vadd.f32 %v476_v32, %v475_v30  ;;  %v485_v38 = vrot.slane %v484_v36, 4  ;;  %v404_v40 = vadd.f32 %v398_v39, %v341_v35  ;;  %s800_s17 = scalar_lea.vmem %s1058_s14, 64  ;;  %s896_s25 = smov [#allocation2]  }
 0x164   : > { %v712_v43 = vpop.f32.mrf.mxu0  ;;  %p801_p13 = scmp.ne.s32.totalorder %s1058_s14, %s800_s17  ;;  %s804_s6 = sshll.u32 %s896_s25, 4  ;;  %s805_s6 = int_to_ptr.vmem [resolvable:$false] %s804_s6 }
 0x165   : > { %v478_v41 = vrot.slane %v477_v37, 2  ;;  %v486_v42 = vadd.f32 %v485_v38, %v484_v36  ;;  %v405_v44 = vpack.c.bf16 %v404_v40, %v404_v40  ;;  %s806_s8 = scalar_lea.vmem %s805_s6, 128  ;;  %p807_p2 = scmp.lt.s32.totalorder %s1058_s14, %s805_s6 }
 0x166   : > { %v401_v47 = vpop.f32.mrf.mxu0  ;;  %p802_p0 = pnand %p801_p13, %p968_p5  ;;  %p808_p3 = scmp.lt.s32.totalorder %s806_s8, %s800_s17 }
 0x167   : > { %v479_v45 = vadd.f32 %v478_v41, %v477_v37  ;;  %v487_v46 = vrot.slane %v486_v42, 2  ;;  %v408_v48 = vunpack.c.l.bf16 %v405_v44  ;;  %407 = vst.msk [vmem:[%s221_s13] sm:$0xf] %vm406_vm3, %v405_v44 }
 0x168   : > { %v713_v51 = vpop.f32.mrf.mxu0  ;;  %p803_p1 = pneg %p802_p0  ;;  %p809_p4 = por %p808_p3, %p807_p2 }
 0x169   : > { %v480_v49 = vrot.slane %v479_v45, 1  ;;  %v488_v50 = vadd.f32 %v487_v46, %v486_v42 }
 0x16a   : > { %p810_p7 = pnand %p809_p4, %p803_p1 }
 0x16c   : > { %813 = shalt.err (!%p810_p7)
}
 0x16d   : > { %s814_s10 = scalar_lea.hbm %s1056_s15, 64  ;;  %s818_s13 = scalar_lea.hbm %s1129_s3, 128 }
 0x16e   : > { %p815_p8 = scmp.ne.s32.totalorder %s1056_s15, %s814_s10  ;;  %p819_p11 = scmp.lt.s32.totalorder %s1056_s15, %s1129_s3 }
 0x16f   : > { %p820_p12 = scmp.lt.s32.totalorder %s818_s13, %s814_s10 }
 0x170   : > { %p816_p9 = pnand %p815_p8, %p968_p5 }
 0x171   : > { %p821_p13 = por %p820_p12, %p819_p11 }
 0x172   : > { %p817_p10 = pneg %p816_p9 }
 0x174   : > { %p822_p0 = pnand %p821_p13, %p817_p10 }
 0x176   : > { %825 = shalt.err (!%p822_p0)
}
 0x177   : > { %720 = dma.vmem_to_hbm [thread:$0]  (%p968_p5), %s1058_s14, 64, %s1056_s15, %s493_s16   ;;  %v410_v52 = vsel %vm409_vm4, %v408_v48, 0.0  ;;  %v419_v53 = vmul.f32 %v408_v48, %v408_v48  ;;  %vm417_vm5 = vcmask 57344   ;;  %v481_v54 = vadd.f32 %v480_v49, %v479_v45 }
 0x178   : > { %v489_v55 = vrot.slane %v488_v50, 1  ;;  %v411_v56 = vrot.slane %v410_v52, 4  ;;  %s235_s17 = scalar_lea.vmem [#allocation6], %s1010_s30  ;;  %s540_s25 = scalar_lea.hbm %s1131_s5, %s1014_s7 }
 0x179   : > { %v420_v57 = vsel %vm409_vm4, %v419_v53, 0.0  ;;  %482 = vst.msk [vmem:[%s235_s17 + $0x2] sm:$0x1] %vm417_vm5, %v481_v54  ;;  %s542_s14 = sshll.u32 %s235_s17, 4  ;;  %s897_s6 = smov [#allocation6]   ;;  %s543_s14 = int_to_ptr.vmem [resolvable:$true] %s542_s14 }
 0x17a   : > { %v490_v58 = vadd.f32 %v489_v55, %v488_v50  ;;  %v412_v59 = vadd.f32 %v411_v56, %v410_v52  ;;  %v421_v60 = vrot.slane %v420_v57, 4  ;;  %s826_s30 = scalar_lea.vmem %s543_s14, 64  ;;  %s830_s8 = sshll.u32 %s897_s6, 4  ;;  %s831_s8 = int_to_ptr.vmem [resolvable:$false] %s830_s8 }
 0x17b   : > { %p827_p1 = scmp.ne.s32.totalorder %s543_s14, %s826_s30  ;;  %s832_s10 = scalar_lea.vmem %s831_s8, 128 }
 0x17c   : > { %v413_v61 = vrot.slane %v412_v59, 2  ;;  %v422_v62 = vadd.f32 %v421_v60, %v420_v57  ;;  %491 = vst.msk [vmem:[%s235_s17 + $0x3] sm:$0x1] %vm417_vm5, %v490_v58  ;;  %p833_p4 = scmp.lt.s32.totalorder %s543_s14, %s831_s8  ;;  %p834_p7 = scmp.lt.s32.totalorder %s832_s10, %s826_s30 }
 0x17d   : > { %p828_p2 = pnand %p827_p1, %p968_p5 }
 0x17e   : > { %v414_v63 = vadd.f32 %v413_v61, %v412_v59  ;;  %v423_v0 = vrot.slane %v422_v62, 2  ;;  %p835_p8 = por %p834_p7, %p833_p4 }
 0x17f   : > { %p829_p3 = pneg %p828_p2 }
 0x180   : > { %v415_v1 = vrot.slane %v414_v63, 1  ;;  %v424_v2 = vadd.f32 %v423_v0, %v422_v62 }
 0x181   : > { %p836_p9 = pnand %p835_p8, %p829_p3 }
 0x182   : > { %v416_v3 = vadd.f32 %v415_v1, %v414_v63  ;;  %v425_v4 = vrot.slane %v424_v2, 1 }
 0x184   : > { %v426_v5 = vadd.f32 %v425_v4, %v424_v2  ;;  %418 = vst.msk [vmem:[%s235_s17] sm:$0x1] %vm417_vm5, %v416_v3 }
 0x186   : > { %427 = vst.msk [vmem:[%s235_s17 + $0x1] sm:$0x1] %vm417_vm5, %v426_v5 }
 0x187   : > { %839 = shalt.err (!%p836_p9)
}
 0x188   : > { %s840_s7 = scalar_lea.hbm %s540_s25, 64  ;;  %s844_s13 = scalar_lea.hbm %s1131_s5, 128 }
 0x189   : > { %p841_p10 = scmp.ne.s32.totalorder %s540_s25, %s840_s7  ;;  %p845_p13 = scmp.lt.s32.totalorder %s540_s25, %s1131_s5 }
 0x18a   : > { %p846_p0 = scmp.lt.s32.totalorder %s844_s13, %s840_s7 }
 0x18b   : > { %p842_p11 = pnand %p841_p10, %p968_p5 }
 0x18c   : > { %p847_p1 = por %p846_p0, %p845_p13 }
 0x18d   : > { %p843_p12 = pneg %p842_p11 }
 0x18f   : > { %p848_p2 = pnand %p847_p1, %p843_p12 }
 0x191   : > { %851 = shalt.err (!%p848_p2)
}
 0x192   : > { %722 = dma.vmem_to_hbm [thread:$0]  (%p968_p5), %s543_s14, 64, %s540_s25, %s1026_s22  }
 0x193 PF: > { %p736_p3 = scmp.ge.s32.totalorder %s890_s21, 2  ;;  %s554_s17 = sand.u32 1, %s878_s18  }
 0x194   : > { %s555_s15 = scalar_lea.sflag [#allocation3], %s554_s17 }
 0x195   : > { %p727_p4 = pnand %p736_p3, %p972_p6 }
 0x197   : > { %p728_p7 = pneg %p727_p4 }
 0x199   : > { %869 = dma.done.wait (%p728_p7), %s555_s15, 64  }
 0x19a   : > { %871 = vsyncadd (%p728_p7), %s555_s15, 4294967232  ;;  %s563_s16 = sand.u32 1, %s662_s23  }
 0x19b   : > { %s564_s30 = scalar_lea.sflag [#allocation5], %s563_s16 }
 0x19c   : > { %873 = dma.done.wait (%p728_p7), %s564_s30, 128  }
 0x19d   : > { %875 = vsyncadd (%p728_p7), %s564_s30, 4294967168  ;;  %p19_p5 = scmp.ge.s32.totalorder %s953_s24, 4   ;;  %s1134_s18 = smov %s882_s19 }
 0x19e   : > { %s1135_s19 = smov %s886_s20  ;;  %s1136_s20 = smov %s966_s27 }
 0x19f   : > { %s1137_s21 = smov %s953_s24  ;;  %21 = sbr.rel (!%p19_p5) target bundleno = 5 (0x5), region = 101 }
 0x1a4   :  { %578 = vsyncpa [#allocation3], 1 }
 0x1a5   :  { %580 = vsyncpa [#allocation3 + $0x1], 1 }
 0x1a6   :  { %581 = vsyncpa [#allocation5], 1 }
 0x1a7   :  { %583 = vsyncpa [#allocation5 + $0x1], 1 }

</bundles_post_ra>
